<compile_context>
chip_gen: v7x
topology: tpu7x:2x2x1
jax: 0.10.0
libtpu: 0.0.40
codegen_flags: <defaults>
</compile_context>

<pallas_src>
import math

import jax
import jax.numpy as jnp
from jax.experimental import pallas as pl
from jax.experimental.pallas import tpu as pltpu

# Matches the PyTorch module exactly (tanh-approximation GELU):
#   0.5 * x * (1 + tanh(sqrt(2/pi) * (x + 0.044715 * x^3)))
_C1 = float(math.sqrt(2.0 / math.pi))
_C2 = _C1 * 0.044715

_BLOCK_BYTES = 4 * 1024 * 1024   # ~4 MiB per pipelined block
_MAX_LANE_BLOCK = 16 * 1024      # cap on lane-axis block width (multiple of 128)
_REPACK_LANES = 1024             # slab width for the repack (slow) path


def _gelu_kernel(x_ref, o_ref):
    # f32 polynomial on the VPU + tanh on the EUP; cast back at the store.
    x = x_ref[...].astype(jnp.float32)
    inner = x * (jnp.float32(_C1) + jnp.float32(_C2) * (x * x))
    y = jnp.float32(0.5) * x * (jnp.float32(1.0) + jnp.tanh(inner))
    o_ref[...] = y.astype(o_ref.dtype)


def _round_up(a, b):
    return -(-a // b) * b


def _pick_tile_rows(rows, tile_lanes, itemsize):
    """Rows per block: ~_BLOCK_BYTES per block, >=2-4 blocks for megacore."""
    if rows <= 8:
        return rows
    bytes_per_row = tile_lanes * itemsize
    target = max(1, _BLOCK_BYTES // bytes_per_row)
    target = max(8, (target // 8) * 8)
    # Keep at least a few grid entries so both v7x TensorCores get work and
    # the pipeline has something to overlap.
    if rows >= 32:
        min_blocks = 4
    elif rows >= 16:
        min_blocks = 2
    else:
        min_blocks = 1
    cap = _round_up(pl.cdiv(rows, min_blocks), 8)
    tile_rows = min(target, cap)
    if tile_rows >= rows:
        return rows                      # single full-extent block
    return max(8, (tile_rows // 8) * 8)  # multiple of 8; edge block is partial


def _gelu_2d(x2d, tile_rows, tile_lanes):
    rows, lanes = x2d.shape
    itemsize = jnp.dtype(x2d.dtype).itemsize
    n = rows * lanes
    grid = (pl.cdiv(rows, tile_rows), pl.cdiv(lanes, tile_lanes))
    return pl.pallas_call(
        _gelu_kernel,
        out_shape=jax.ShapeDtypeStruct((rows, lanes), x2d.dtype),
        grid=grid,
        in_specs=[pl.BlockSpec((tile_rows, tile_lanes), lambda i, j: (i, j))],
        out_specs=pl.BlockSpec((tile_rows, tile_lanes), lambda i, j: (i, j)),
        compiler_params=pltpu.CompilerParams(
            # Fully independent elementwise blocks -> shard across TensorCores.
            dimension_semantics=("parallel", "parallel"),
            # 2 x (in + out) x ~4 MiB blocks fits; pin the limit so it also
            # works on v5e's 16 MiB default scoped VMEM.
            vmem_limit_bytes=32 << 20,
        ),
        cost_estimate=pl.CostEstimate(
            flops=8 * n, transcendentals=n, bytes_accessed=2 * n * itemsize),
    )(x2d)


def gelu_pallas(x: jax.Array) -> jax.Array:
    """Tanh-approximation GELU matching the PyTorch module's forward."""
    orig_shape = x.shape
    total = x.size
    if total == 0:
        return x
    itemsize = jnp.dtype(x.dtype).itemsize

    # Fast path: trailing dim is already lane-aligned -> zero-copy reshape
    # (only leading dims collapse), native lane axis, no pad / slice passes.
    if x.ndim >= 1 and orig_shape[-1] % 128 == 0:
        d = orig_shape[-1]
        rows = total // d
        x2d = x.reshape(rows, d)
        tile_lanes = d if d <= _MAX_LANE_BLOCK else _MAX_LANE_BLOCK
        tile_rows = _pick_tile_rows(rows, tile_lanes, itemsize)
        out2d = _gelu_2d(x2d, tile_rows, tile_lanes)
        return out2d.reshape(orig_shape)

    # Slow path (trailing dim not a multiple of 128): flatten and repack into
    # a lane-dense slab, padding only to the lane width (gelu(0) == 0 and the
    # padding is sliced off). There is no row padding — the grid uses a
    # partial edge block instead.
    flat = x.reshape(-1)
    lanes = _REPACK_LANES if total >= _REPACK_LANES else _round_up(total, 128)
    padded = _round_up(total, lanes)
    if padded != total:
        flat = jnp.pad(flat, (0, padded - total))
    rows = padded // lanes
    x2d = flat.reshape(rows, lanes)
    tile_rows = _pick_tile_rows(rows, lanes, itemsize)
    out2d = _gelu_2d(x2d, tile_rows, lanes)
    out = out2d.reshape(-1)
    if padded != total:
        out = out[:total]
    return out.reshape(orig_shape)


def _gelu_ref(x):
    # Pure-JAX reference mirroring the PyTorch forward (computed in f32).
    xf = x.astype(jnp.float32)
    c = jnp.float32(_C1)
    y = 0.5 * xf * (1.0 + jnp.tanh(c * (xf + 0.044715 * jnp.power(xf, 3))))
    return y.astype(x.dtype)


if __name__ == "__main__":
    key = jax.random.PRNGKey(0)
    k1, k2, k3, k4 = jax.random.split(key, 4)

    # Small shapes consistent with an elementwise activation:
    #  - (2, 8, 128) f32 : fast path, lane-aligned trailing dim
    #  - (4, 16, 96) f32 : repack path, element count a multiple of 1024
    #  - (2, 8, 32)  f32 : repack path, tiny, lane padding exercised
    #  - (2, 64, 256) bf16: fast path with dtype-scaled tiling
    cases = [
        (jax.random.normal(k1, (2, 8, 128), dtype=jnp.float32), 1e-5),
        (jax.random.normal(k2, (4, 16, 96), dtype=jnp.float32), 1e-5),
        (jax.random.normal(k3, (2, 8, 32), dtype=jnp.float32), 1e-5),
        (jax.random.normal(k4, (2, 64, 256), dtype=jnp.bfloat16), 2e-2),
    ]

    for x, tol in cases:
        out = gelu_pallas(x)
        jax.block_until_ready(out)
        ref = _gelu_ref(x)
        assert out.shape == x.shape and out.dtype == x.dtype
        assert jnp.allclose(out.astype(jnp.float32), ref.astype(jnp.float32),
                            atol=tol, rtol=tol)

    print("KERNEL_OK")
</pallas_src>

<mosaic_0001>
module attributes {stable_mosaic.version = 11 : i64} {
  func.func @_gelu_kernel(%arg0: i32, %arg1: i32, %arg2: memref<8x128xf32, #tpu.memory_space<vmem>>, %arg3: memref<8x128xf32, #tpu.memory_space<vmem>>) attributes {dimension_semantics = [#tpu.dimension_semantics<parallel>, #tpu.dimension_semantics<parallel>], iteration_bounds = array<i64: 2, 1>, scalar_prefetch = 0 : i64, scratch_operands = 0 : i64, tpu.core_type = #tpu.core_type<tc>, window_params = [{transform_indices = @transform_0, window_bounds = array<i64: 8, 128>}, {transform_indices = @transform_1, window_bounds = array<i64: 8, 128>}]} {
    %c0 = arith.constant 0 : index
    %c0_0 = arith.constant 0 : index
    %0 = vector.load %arg2[%c0, %c0_0] : memref<8x128xf32, #tpu.memory_space<vmem>>, vector<8x128xf32>
    %1 = arith.mulf %0, %0 : vector<8x128xf32>
    %cst = arith.constant 0.0356774069 : f32
    %2 = vector.broadcast %cst : f32 to vector<8x128xf32>
    %3 = arith.mulf %2, %1 : vector<8x128xf32>
    %cst_1 = arith.constant 0.797884583 : f32
    %4 = vector.broadcast %cst_1 : f32 to vector<8x128xf32>
    %5 = arith.addf %4, %3 : vector<8x128xf32>
    %6 = arith.mulf %0, %5 : vector<8x128xf32>
    %cst_2 = arith.constant 5.000000e-01 : f32
    %7 = vector.broadcast %cst_2 : f32 to vector<8x128xf32>
    %8 = arith.mulf %7, %0 : vector<8x128xf32>
    %9 = math.tanh %6 : vector<8x128xf32>
    %cst_3 = arith.constant 1.000000e+00 : f32
    %10 = vector.broadcast %cst_3 : f32 to vector<8x128xf32>
    %11 = arith.addf %10, %9 : vector<8x128xf32>
    %12 = arith.mulf %8, %11 : vector<8x128xf32>
    %c0_4 = arith.constant 0 : index
    %c0_5 = arith.constant 0 : index
    %13 = vector.load %arg3[%c0_4, %c0_5] : memref<8x128xf32, #tpu.memory_space<vmem>>, vector<8x128xf32>
    tpu.vector_store %arg3[%c0_4, %c0_5], %12 {strides = array<i32>} : memref<8x128xf32, #tpu.memory_space<vmem>>, vector<8x128xf32>,
    return
  }
  func.func @transform_0(%arg0: i32, %arg1: i32) -> (i32, i32) {
    %c0_i32 = arith.constant 0 : i32
    return %arg0, %arg1 : i32, i32
  }
  func.func @transform_1(%arg0: i32, %arg1: i32) -> (i32, i32) {
    %c0_i32 = arith.constant 0 : i32
    return %arg0, %arg1 : i32, i32
  }
}

</mosaic_0001>

<bundles_post_ra>
// kernel: tpu_custom_call.1
= control target key start
LH: loop header
LB: loop body
LE: loop exit
PB: predicated region body
PF: predicated region fallthrough
CT: control target
= control target key end

     0   :  { %6 = vsyncpa [#allocation3], 0  ;;  %s629_s0 = inlined_call_operand.hbm [shape: f32[16,128], index: 0, kind: input, shape index: {}]   ;;  %s630_s1 = inlined_call_operand.hbm [shape: f32[16,128], index: 1, kind: output, shape index: {}]  }
   0x1   :  { %8 = vsyncpa [#allocation3 + $0x1], 0 }
   0x2   :  { %9 = vsyncpa [#allocation4], 0 }
   0x3   :  { %11 = vsyncpa [#allocation4 + $0x1], 0  ;;  %s457_s6 = smov 0   ;;  %s459_s7 = smov 0  }
   0x4   :  { %s461_s8 = smov 0   ;;  %s463_s9 = smov 0  }
   0x5   :  { %s465_s10 = smov 0   ;;  %s467_s11 = smov 0  }
   0x6 LB: > { %s254_s12 = sadd.s32 4294967295, %s443_s11   ;;  %s255_s13 = sadd.s32 4294967294, %s443_s11   ;;  %s443_s11 = sphi %s467_s11, %s17_s11   ;;  %s439_s10 = sphi %s465_s10, %s646_s10   ;;  %s435_s9 = sphi %s463_s9, %s645_s9   ;;  %s431_s8 = sphi %s461_s8, %s644_s8   ;;  %s427_s7 = sphi %s459_s7, %s643_s7   ;;  %s423_s6 = sphi %s457_s6, %s642_s6  }
   0x7   : > { %s29_s14 = sadd.s32 1, %s439_s10  ;;  %s38_s15 = sadd.s32 1, %s431_s8 }
   0x8   : > { %p31_p0 = scmp.ge.s32.totalorder %s29_s14, 2  ;;  %p45_p1 = scmp.ne.s32.totalorder %s431_s8, %s427_s7 }
   0x9   : > { %p46_p2 = scmp.eq.s32.totalorder %s443_s11, 0  ;;  %p51_p3 = scmp.ne.s32.totalorder %s427_s7, %s423_s6 }
   0xa   : > { %s648_s14 = smov (%p31_p0, %s29_s14), 0  ;;  %p52_p5 = scmp.eq.s32.totalorder %s254_s12, 0 }
   0xb   : > { %p498_p4 = por %p46_p2, %p45_p1  ;;  %s33_s17 = ssub.s32 %s439_s10, %s648_s14 }
   0xc   : > { %p77_p6 = scmp.eq.s32.totalorder %s254_s12, 1  ;;  %p36_p7 = scmp.eq.s32.totalorder %s33_s17, 0 }
   0xd   : > { %p504_p8 = por %p52_p5, %p51_p3  ;;  %p83_p10 = scmp.eq.s32.totalorder %s255_s13, 1 }
   0xe   : > { %p508_p9 = por %p77_p6, %p45_p1  ;;  %p279_p13 = scmp.lt.s32.totalorder %s443_s11, 2 }
   0xf   : > { %s513_s20 = scalar_select %p36_p7, %s431_s8, %s38_s15  }
  0x10   : > { %s634_s19 = scalar_select %p508_p9, 1, 0 }
  0x11   : > { %p515_p11 = por %p83_p10, %p51_p3  ;;  %s103_s22 = sand.u32 1, %s431_s8  }
  0x12   : > { %s258_s23 = sshll.u32 %s103_s22, 3  ;;  %s259_s24 = sshll.u32 %s439_s10, 7 }
  0x13   : > { %s635_s21 = scalar_select %p515_p11, 1, 0 }
  0x14   : > { %s526_s27 = scalar_lea.hbm %s629_s0, %s259_s24  ;;  %s107_s28 = scalar_lea.vmem [#allocation2], %s258_s23 }
  0x15   : > { %s115_s29 = sshll.u32 %s107_s28, 4  ;;  %p532_p0 = pnand %p279_p13, %p498_p4  ;;  %s528_s29 = int_to_ptr.vmem [resolvable:$true] %s115_s29 }
  0x16   : > { %s104_s2 = scalar_lea.sflag [#allocation3], %s103_s22  ;;  %s331_s3 = scalar_lea.hbm %s526_s27, 128 }
  0x17   : > { %p332_p3 = scmp.ne.s32.totalorder %s526_s27, %s331_s3  ;;  %p333_p5 = pneg %p532_p0 }
  0x18   : > { %s336_s12 = scalar_lea.hbm %s629_s0, 256  ;;  %p337_p4 = scmp.lt.u32.totalorder %s526_s27, %s629_s0 }
  0x19   : > { %p334_p6 = pnand %p333_p5, %p332_p3  ;;  %p338_p10 = scmp.lt.u32.totalorder %s336_s12, %s331_s3 }
  0x1a   : > { %p340_p12 = scmp.lt.u32.totalorder %s331_s3, %s526_s27 }
  0x1b   : > { %p335_p7 = pneg %p334_p6  ;;  %p339_p13 = por %p338_p10, %p337_p4 }
  0x1d   : > { %p341_p1 = por %p340_p12, %p339_p13 }
  0x1f   : > { %p342_p2 = pnand %p341_p1, %p335_p7 }
  0x21   : > { %345 = shalt.err (!%p342_p2)
}
  0x22   : > { %s346_s16 = scalar_lea.vmem %s528_s29, 128  ;;  %s445_s17 = smov [#allocation2]  }
  0x23   : > { %p347_p3 = scmp.ne.s32.totalorder %s528_s29, %s346_s16  ;;  %s351_s22 = sshll.u32 %s445_s17, 4  ;;  %s352_s22 = int_to_ptr.vmem [resolvable:$false] %s351_s22 }
  0x24   : > { %s353_s23 = scalar_lea.vmem %s352_s22, 256  ;;  %p354_p9 = scmp.lt.s32.totalorder %s528_s29, %s352_s22 }
  0x25   : > { %p349_p6 = pnand %p347_p3, %p333_p5  ;;  %p355_p4 = scmp.lt.s32.totalorder %s353_s23, %s346_s16 }
  0x27   : > { %p350_p11 = pneg %p349_p6  ;;  %p356_p10 = por %p355_p4, %p354_p9 }
  0x29   : > { %p357_p12 = pnand %p356_p10, %p350_p11 }
  0x2b   : > { %360 = shalt.err (!%p357_p12)
}
  0x2c   : > { %274 = dma.hbm_to_vmem [thread:$0]  (!%p532_p0), %s526_s27, 128, %s528_s29, %s104_s2  }
  0x2d   : > { %p637_p1 = scmp.lt.s32.totalorder %s443_s11, 3  ;;  %p638_p2 = scmp.ge.s32.totalorder %s443_s11, 1 }
  0x2f   : > { %p121_p5 = pnand %p638_p2, %p637_p1 }
  0x30   : > { %s568_s24 = sand.u32 (!%p121_p5), 1, %s427_s7  }
  0x31   : > { %124 = sbr.rel (%p121_p5) target bundleno = 95 (0x5f), region = 24  ;;  %s261_s25 = sshll.u32 (!%p121_p5), %s568_s24, 3 }
  0x32   : > { %s127_s26 = scalar_lea.sflag (!%p121_p5), [#allocation3], %s568_s24  ;;  %s130_s28 = scalar_lea.vmem (!%p121_p5), [#allocation2], %s261_s25 }
  0x38   : > { %414 = dma.done.wait (%p504_p8), %s127_s26, 128  }
  0x39   : > { %416 = vsyncadd (%p504_p8), %s127_s26, 4294967168  ;;  %v149_v0 = vld [vmem:[%s130_s28] sm:$0xff]  ;;  %s148_s27 = scalar_lea.vmem [#allocation5], %s261_s25  ;;  %s264_s30 = sshll.u32 %s435_s9, 7 }
  0x3a   : > { %v150_v1 = vmul.f32 %v149_v0, %v149_v0  ;;  %v154_v5 = vmul.f32 0.5, %v149_v0  ;;  %s174_s29 = sshll.u32 %s148_s27, 4  ;;  %s582_s3 = scalar_lea.hbm %s630_s1, %s264_s30  ;;  %s577_s29 = int_to_ptr.vmem [resolvable:$true] %s174_s29 }
  0x3b   : > { %s160_s4 = scalar_lea.sflag [#allocation4], %s568_s24  ;;  %s361_s5 = scalar_lea.vmem %s577_s29, 128 }
  0x3c   : > { %v151_v2 = vmul.f32 0.035677407, %v150_v1  ;;  %p362_p8 = scmp.ne.s32.totalorder %s577_s29, %s361_s5  ;;  %p639_p9 = scmp.ne.s32.totalorder %s634_s19, 0 }
  0x3d   : > { %s446_s9 = smov [#allocation5]  }
  0x3e   : > { %v152_v3 = vadd.f32 0.7978846, %v151_v2  ;;  %p363_p11 = pnand %p362_p8, %p639_p9  ;;  %s365_s12 = sshll.u32 %s446_s9, 4  ;;  %s366_s12 = int_to_ptr.vmem [resolvable:$false] %s365_s12 }
  0x3f   : > { %s367_s13 = scalar_lea.vmem %s366_s12, 256  ;;  %p368_p7 = scmp.lt.s32.totalorder %s577_s29, %s366_s12 }
  0x40   : > { %v153_v4 = vmul.f32 %v152_v3, %v149_v0  ;;  %p364_p0 = pneg %p363_p11  ;;  %p369_p13 = scmp.lt.s32.totalorder %s367_s13, %s361_s5 }
  0x42   : > { %329 = vtanh.f32 %v153_v4  ;;  %p370_p3 = por %p369_p13, %p368_p7 }
  0x44   : > { %p371_p6 = pnand %p370_p3, %p364_p0 }
  0x4c   : > { %v330_v6 = vpop.eup %329 }
  0x4d   : > { %v156_v7 = vadd.f32 1.0, %v330_v6 }
  0x4f   : > { %v157_v8 = vmul.f32 %v156_v7, %v154_v5 }
  0x51   : > { %158 = vst [vmem:[%s148_s27] sm:$0xff] %v157_v8 }
  0x52   : > { %374 = shalt.err (!%p371_p6)
}
  0x53   : > { %s375_s15 = scalar_lea.hbm %s582_s3, 128  ;;  %s379_s22 = scalar_lea.hbm %s630_s1, 256 }
  0x54   : > { %p376_p4 = scmp.ne.s32.totalorder %s582_s3, %s375_s15  ;;  %p380_p1 = scmp.lt.u32.totalorder %s582_s3, %s630_s1 }
  0x55   : > { %p381_p2 = scmp.lt.u32.totalorder %s379_s22, %s375_s15  ;;  %p383_p8 = scmp.lt.u32.totalorder %s375_s15, %s582_s3 }
  0x56   : > { %p377_p10 = pnand %p376_p4, %p639_p9 }
  0x57   : > { %p382_p5 = por %p381_p2, %p380_p1 }
  0x58   : > { %p378_p12 = pneg %p377_p10 }
  0x59   : > { %p384_p11 = por %p383_p8, %p382_p5 }
  0x5b   : > { %p385_p0 = pnand %p384_p11, %p378_p12 }
  0x5d   : > { %388 = shalt.err (!%p385_p0)
}
  0x5e   : > { %269 = dma.vmem_to_hbm [thread:$0]  (%p639_p9), %s577_s29, 128, %s582_s3, %s160_s4  }
  0x5f PF: > { %s186_s25 = sand.u32 1, %s423_s6   ;;  %p640_p7 = scmp.ne.s32.totalorder %s635_s21, 0 }
  0x60   : > { %p641_p13 = scmp.ge.s32.totalorder %s443_s11, 2  ;;  %s187_s26 = scalar_lea.sflag [#allocation4], %s186_s25 }
  0x62   : > { %p276_p3 = pnand %p641_p13, %p640_p7 }
  0x64   : > { %418 = dma.done.wait (!%p276_p3), %s187_s26, 128  }
  0x65   : > { %420 = vsyncadd (!%p276_p3), %s187_s26, 4294967168  ;;  %s17_s11 = sadd.s32 1, %s443_s11   ;;  %s642_s6 = smov %s427_s7 }
  0x66   : > { %p14_p6 = scmp.ge.s32.totalorder %s17_s11, 4   ;;  %s643_s7 = smov %s431_s8 }
  0x67   : > { %s644_s8 = smov %s513_s20  ;;  %s645_s9 = smov %s439_s10 }
  0x68   : > { %s646_s10 = smov %s648_s14  ;;  %16 = sbr.rel (!%p14_p6) target bundleno = 6 (0x6), region = 69 }
  0x6f   :  { %192 = vsyncpa [#allocation3], 1 }
  0x70   :  { %194 = vsyncpa [#allocation3 + $0x1], 1 }
  0x71   :  { %195 = vsyncpa [#allocation4], 1 }
  0x72   :  { %197 = vsyncpa [#allocation4 + $0x1], 1 }

</bundles_post_ra>
